<compile_context>
chip_gen: v7x
topology: tpu7x:2x2x1
jax: 0.10.0
libtpu: 0.0.40
codegen_flags: <defaults>
</compile_context>

<pallas_src>
import functools

import jax
import jax.numpy as jnp
from jax.experimental import pallas as pl
from jax.experimental.pallas import tpu as pltpu


def _group_norm_kernel(x_ref, w_ref, b_ref, o_ref, *, eps, inv_count,
                       valid_len, needs_mask):
    """One grid step: `rows` independent (batch, group) rows of length L.

    x_ref:       (rows, L) input block (any float dtype)
    w_ref/b_ref: (rows, L) per-channel affine, pre-expanded along lanes
    o_ref:       (rows, L) output block
    """
    x = x_ref[...].astype(jnp.float32)

    if needs_mask:
        # Ragged tail: mask the physically padded lanes out of the statistics.
        lane = jax.lax.broadcasted_iota(jnp.int32, (1, x.shape[-1]), 1)
        valid = lane < valid_len
        xs = jnp.where(valid, x, 0.0)
    else:
        xs = x

    # Pass 1: mean (lane reduce -> XLU slot, not VALU).
    mean = jnp.sum(xs, axis=-1, keepdims=True) * inv_count

    # Pass 2: centered second moment (numerically stable two-pass variance).
    d = xs - mean
    if needs_mask:
        d = jnp.where(valid, d, 0.0)
    var = jnp.sum(d * d, axis=-1, keepdims=True) * inv_count
    inv_std = jax.lax.rsqrt(var + eps)           # EUP slot

    # Normalize + per-channel affine.  gamma/beta are already lane-expanded,
    # so no cross-lane relayout happens inside the kernel.  Stats/normalize
    # stay in f32 (safe on v5e too); only the final store casts.
    x_hat = d * inv_std
    w = w_ref[...].astype(jnp.float32)
    b = b_ref[...].astype(jnp.float32)
    o_ref[...] = (x_hat * w + b).astype(o_ref.dtype)


def _vmem_limit_bytes():
    """Scoped-VMEM limit for the kernel, derived from the chip when possible."""
    try:
        cap = pltpu.get_tpu_info().vmem_capacity_bytes
    except Exception:
        cap = 64 * 1024 * 1024  # conservative (v7x physical VMEM)
    return max(32 * 1024 * 1024, min(64 * 1024 * 1024, (cap * 3) // 4))


def _choose_row_block(N, G, L, itemsize, vmem_limit, min_steps=4):
    """Pick rows-per-grid-step (rows = fused (batch, group) rows).

    Returns (rows, resident_params):
      resident_params=True  -> rows is a multiple of G, gamma/beta pattern is
                               block-invariant (constant block index, read
                               from HBM once, resident in VMEM).
      resident_params=False -> sub-group row blocks (rows | G, rows % 8 == 0);
                               gamma/beta re-read per step.  Only used when no
                               whole-batch block fits the VMEM budget.
    """
    R = N * G
    lanes_padded = ((L + 127) // 128) * 128

    def footprint(rows, resident):
        data_buf = rows * L * itemsize           # one x (or out) block
        f32_tmp = rows * lanes_padded * 4        # in-kernel f32 working copy
        param_bufs = (1 if resident else 2) * 2 * data_buf  # gamma + beta
        # x (double buffered) + out (double buffered) + params + f32 temps
        return 2 * data_buf + 2 * data_buf + param_bufs + 2 * f32_tmp

    budget = (vmem_limit * 7) // 10  # headroom for compiler scratch

    # Preferred: whole batches per step -> gamma/beta pattern is periodic.
    preferred = []
    for bn in range(N, 0, -1):
        if N % bn:
            continue
        rows = bn * G
        if rows % 8 == 0 or rows == R:           # (8,128) rule on dim -2
            preferred.append(rows)               # descending
    in_budget = [r for r in preferred if footprint(r, True) <= budget]
    if in_budget:
        # Prefer >= min_steps grid steps (>= 2 per TensorCore on v7x), then
        # >= 2 steps (pipelining), then the largest block that fits.
        for want_steps in (min_steps, 2):
            stepped = [r for r in in_budget if R // r >= want_steps]
            if stepped:
                return stepped[0], True
        return in_budget[0], True

    # Fallback: sub-group row blocks (gamma/beta re-read each step).
    fallback = [d for d in range(G - 1, 0, -1) if G % d == 0 and d % 8 == 0]
    fb_in = [d for d in fallback if footprint(d, False) <= budget]
    if fb_in:
        return fb_in[0], False
    if fallback:
        # Nothing fits the budget; degrade to the smallest legal block and let
        # the compiler try.
        # TODO(synk): reduction split over L for this case (see header).
        return fallback[-1], False
    return preferred[-1], True


def group_norm(x, num_groups, weight, bias, eps=1e-5):
    """GroupNorm forward matching torch.nn.functional.group_norm.

    x:      (N, C, *spatial)   any number of trailing spatial dims (>= 0)
    weight: (C,) or None       per-channel scale (gamma)
    bias:   (C,) or None       per-channel shift (beta)
    """
    orig_shape = x.shape
    N, C = orig_shape[0], orig_shape[1]
    G = int(num_groups)
    assert C % G == 0, "num_channels must be divisible by num_groups"
    Cg = C // G
    HW = 1
    for d in orig_shape[2:]:
        HW *= int(d)
    HW = max(HW, 1)
    L = Cg * HW            # elements reduced per (batch, group)
    R = N * G              # one lane-dense row per (batch, group)

    if weight is None:
        weight = jnp.ones((C,), dtype=x.dtype)
    if bias is None:
        bias = jnp.zeros((C,), dtype=x.dtype)

    # Lane-dense 2-D slab: one (batch, group) per row.  Free reshape, NO pad.
    x2 = x.reshape(R, L)

    # Per-group affine pattern along the lane axis, in x.dtype:
    #   row g, lane cc*HW + s  ->  weight[g*Cg + cc]
    w_pat = jnp.repeat(weight.astype(x.dtype).reshape(G, Cg), HW, axis=1)
    b_pat = jnp.repeat(bias.astype(x.dtype).reshape(G, Cg), HW, axis=1)

    vmem_limit = _vmem_limit_bytes()
    rows, resident = _choose_row_block(N, G, L, x.dtype.itemsize, vmem_limit)

    if resident:
        reps = rows // G
        w_blk = jnp.tile(w_pat, (reps, 1)) if reps > 1 else w_pat
        b_blk = jnp.tile(b_pat, (reps, 1)) if reps > 1 else b_pat
        param_index = lambda i: (0, 0)           # resident across all steps
    else:
        w_blk, b_blk = w_pat, b_pat              # (G, L) slab, period G rows
        nblk = G // rows
        param_index = lambda i: (i % nblk, 0)

    kernel = functools.partial(
        _group_norm_kernel,
        eps=float(eps),
        inv_count=1.0 / float(L),
        valid_len=L,
        needs_mask=(L % 128 != 0),
    )

    grid = (R // rows,)

    def build(buffer_params_once):
        if buffer_params_once:
            # Constant block index -> a single (resident) buffer is enough.
            param_spec = pl.BlockSpec((rows, L), param_index,
                                      pipeline_mode=pl.Buffered(1))
        else:
            param_spec = pl.BlockSpec((rows, L), param_index)
        return pl.pallas_call(
            kernel,
            out_shape=jax.ShapeDtypeStruct((R, L), x.dtype),
            grid_spec=pltpu.PrefetchScalarGridSpec(
                num_scalar_prefetch=0,
                grid=grid,
                in_specs=[
                    pl.BlockSpec((rows, L), lambda i: (i, 0)),
                    param_spec,
                    param_spec,
                ],
                out_specs=pl.BlockSpec((rows, L), lambda i: (i, 0)),
            ),
            compiler_params=pltpu.CompilerParams(
                dimension_semantics=("parallel",),
                vmem_limit_bytes=vmem_limit,
            ),
        )

    try:
        out2 = build(resident)(x2, w_blk, b_blk)
    except Exception:
        # pipeline_mode support can vary across JAX versions; retry with the
        # default (double-buffered) param BlockSpecs.
        out2 = build(False)(x2, w_blk, b_blk)

    return out2.reshape(orig_shape)


def group_norm_reference(x, num_groups, weight, bias, eps=1e-5):
    """Pure-JAX reference, semantics of F.group_norm (two-pass, f32)."""
    orig_shape = x.shape
    N, C = orig_shape[0], orig_shape[1]
    G = num_groups
    x_r = x.reshape(N, G, -1).astype(jnp.float32)
    mean = jnp.mean(x_r, axis=-1, keepdims=True)
    var = jnp.mean((x_r - mean) ** 2, axis=-1, keepdims=True)
    x_hat = ((x_r - mean) / jnp.sqrt(var + eps)).reshape(orig_shape)
    bshape = (1, C) + (1,) * (len(orig_shape) - 2)
    return (x_hat * weight.reshape(bshape) + bias.reshape(bshape)).astype(x.dtype)


if __name__ == "__main__":
    # Module config: GroupNorm(num_groups=2, num_channels=4)
    num_groups = 2
    num_channels = 4
    eps = 1e-5

    key = jax.random.PRNGKey(0)
    kx, kw, kb = jax.random.split(key, 3)
    x = jax.random.normal(kx, (2, num_channels, 16, 16), dtype=jnp.float32)

    # reset_parameters(): gamma = 1, beta = 0.
    weight = jnp.ones((num_channels,), dtype=jnp.float32)
    bias = jnp.zeros((num_channels,), dtype=jnp.float32)

    y = jax.block_until_ready(group_norm(x, num_groups, weight, bias, eps))
    y_ref = group_norm_reference(x, num_groups, weight, bias, eps)
    assert y.shape == x.shape and y.dtype == x.dtype
    assert jnp.allclose(y, y_ref, atol=1e-5, rtol=1e-5), "mismatch vs reference"

    # Also exercise a non-trivial affine to validate the per-channel path.
    w2 = jax.random.normal(kw, (num_channels,), dtype=jnp.float32)
    b2 = jax.random.normal(kb, (num_channels,), dtype=jnp.float32)
    y2 = jax.block_until_ready(group_norm(x, num_groups, w2, b2, eps))
    y2_ref = group_norm_reference(x, num_groups, w2, b2, eps)
    assert jnp.allclose(y2, y2_ref, atol=1e-5, rtol=1e-5), "affine mismatch"

    print("KERNEL_OK")
</pallas_src>

<mosaic_0001>
module attributes {stable_mosaic.version = 11 : i64} {
  func.func @_group_norm_kernel(%arg0: i32, %arg1: memref<4x512xf32, #tpu.memory_space<vmem>>, %arg2: memref<4x512xf32, #tpu.memory_space<vmem>>, %arg3: memref<4x512xf32, #tpu.memory_space<vmem>>, %arg4: memref<4x512xf32, #tpu.memory_space<vmem>>) attributes {dimension_semantics = [#tpu.dimension_semantics<parallel>], iteration_bounds = array<i64: 1>, scalar_prefetch = 0 : i64, scratch_operands = 0 : i64, tpu.core_type = #tpu.core_type<tc>, window_params = [{transform_indices = @transform_0, window_bounds = array<i64: 4, 512>}, {pipeline_mode = #tpu.pipeline_mode<synchronous>, transform_indices = @transform_1, window_bounds = array<i64: 4, 512>}, {pipeline_mode = #tpu.pipeline_mode<synchronous>, transform_indices = @transform_2, window_bounds = array<i64: 4, 512>}, {transform_indices = @transform_3, window_bounds = array<i64: 4, 512>}]} {
    %c0 = arith.constant 0 : index
    %c0_0 = arith.constant 0 : index
    %0 = vector.load %arg1[%c0, %c0_0] : memref<4x512xf32, #tpu.memory_space<vmem>>, vector<4x512xf32>
    %cst = arith.constant dense<0.000000e+00> : vector<4xf32>
    %1 = vector.multi_reduction <add>, %0, %cst [1] : vector<4x512xf32> to vector<4xf32>
    %2 = vector.shape_cast %1 : vector<4xf32> to vector<4x1xf32>
    %cst_1 = arith.constant 0.001953125 : f32
    %3 = vector.broadcast %cst_1 : f32 to vector<4x1xf32>
    %4 = arith.mulf %2, %3 : vector<4x1xf32>
    %5 = vector.broadcast %4 : vector<4x1xf32> to vector<4x512xf32>
    %6 = arith.subf %0, %5 : vector<4x512xf32>
    %7 = arith.mulf %6, %6 : vector<4x512xf32>
    %cst_2 = arith.constant dense<0.000000e+00> : vector<4xf32>
    %8 = vector.multi_reduction <add>, %7, %cst_2 [1] : vector<4x512xf32> to vector<4xf32>
    %9 = vector.shape_cast %8 : vector<4xf32> to vector<4x1xf32>
    %cst_3 = arith.constant 0.001953125 : f32
    %10 = vector.broadcast %cst_3 : f32 to vector<4x1xf32>
    %11 = arith.mulf %9, %10 : vector<4x1xf32>
    %cst_4 = arith.constant 9.99999974E-6 : f32
    %12 = vector.broadcast %cst_4 : f32 to vector<4x1xf32>
    %13 = arith.addf %11, %12 : vector<4x1xf32>
    %14 = math.rsqrt %13 : vector<4x1xf32>
    %15 = vector.broadcast %14 : vector<4x1xf32> to vector<4x512xf32>
    %16 = arith.mulf %6, %15 : vector<4x512xf32>
    %c0_5 = arith.constant 0 : index
    %c0_6 = arith.constant 0 : index
    %17 = vector.load %arg2[%c0_5, %c0_6] : memref<4x512xf32, #tpu.memory_space<vmem>>, vector<4x512xf32>
    %c0_7 = arith.constant 0 : index
    %c0_8 = arith.constant 0 : index
    %18 = vector.load %arg3[%c0_7, %c0_8] : memref<4x512xf32, #tpu.memory_space<vmem>>, vector<4x512xf32>
    %19 = arith.mulf %16, %17 : vector<4x512xf32>
    %20 = arith.addf %19, %18 : vector<4x512xf32>
    %c0_9 = arith.constant 0 : index
    %c0_10 = arith.constant 0 : index
    %21 = vector.load %arg4[%c0_9, %c0_10] : memref<4x512xf32, #tpu.memory_space<vmem>>, vector<4x512xf32>
    tpu.vector_store %arg4[%c0_9, %c0_10], %20 {strides = array<i32>} : memref<4x512xf32, #tpu.memory_space<vmem>>, vector<4x512xf32>,
    return
  }
  func.func @transform_0(%arg0: i32) -> (i32, i32) {
    %c0_i32 = arith.constant 0 : i32
    %c0_i32_0 = arith.constant 0 : i32
    return %arg0, %c0_i32 : i32, i32
  }
  func.func @transform_1(%arg0: i32) -> (i32, i32) {
    %c0_i32 = arith.constant 0 : i32
    %c0_i32_0 = arith.constant 0 : i32
    %c0_i32_1 = arith.constant 0 : i32
    return %c0_i32, %c0_i32_0 : i32, i32
  }
  func.func @transform_2(%arg0: i32) -> (i32, i32) {
    %c0_i32 = arith.constant 0 : i32
    %c0_i32_0 = arith.constant 0 : i32
    %c0_i32_1 = arith.constant 0 : i32
    return %c0_i32, %c0_i32_0 : i32, i32
  }
  func.func @transform_3(%arg0: i32) -> (i32, i32) {
    %c0_i32 = arith.constant 0 : i32
    %c0_i32_0 = arith.constant 0 : i32
    return %arg0, %c0_i32 : i32, i32
  }
}

module attributes {stable_mosaic.version = 11 : i64} {
  func.func @_group_norm_kernel(%arg0: i32, %arg1: memref<4x512xf32, #tpu.memory_space<vmem>>, %arg2: memref<4x512xf32, #tpu.memory_space<vmem>>, %arg3: memref<4x512xf32, #tpu.memory_space<vmem>>, %arg4: memref<4x512xf32, #tpu.memory_space<vmem>>) attributes {dimension_semantics = [#tpu.dimension_semantics<parallel>], iteration_bounds = array<i64: 1>, scalar_prefetch = 0 : i64, scratch_operands = 0 : i64, tpu.core_type = #tpu.core_type<tc>, window_params = [{transform_indices = @transform_0, window_bounds = array<i64: 4, 512>}, {pipeline_mode = #tpu.pipeline_mode<synchronous>, transform_indices = @transform_1, window_bounds = array<i64: 4, 512>}, {pipeline_mode = #tpu.pipeline_mode<synchronous>, transform_indices = @transform_2, window_bounds = array<i64: 4, 512>}, {transform_indices = @transform_3, window_bounds = array<i64: 4, 512>}]} {
    %c0 = arith.constant 0 : index
    %c0_0 = arith.constant 0 : index
    %0 = vector.load %arg1[%c0, %c0_0] : memref<4x512xf32, #tpu.memory_space<vmem>>, vector<4x512xf32>
    %cst = arith.constant dense<0.000000e+00> : vector<4xf32>
    %1 = vector.multi_reduction <add>, %0, %cst [1] : vector<4x512xf32> to vector<4xf32>
    %2 = vector.shape_cast %1 : vector<4xf32> to vector<4x1xf32>
    %cst_1 = arith.constant 0.001953125 : f32
    %3 = vector.broadcast %cst_1 : f32 to vector<4x1xf32>
    %4 = arith.mulf %2, %3 : vector<4x1xf32>
    %5 = vector.broadcast %4 : vector<4x1xf32> to vector<4x512xf32>
    %6 = arith.subf %0, %5 : vector<4x512xf32>
    %7 = arith.mulf %6, %6 : vector<4x512xf32>
    %cst_2 = arith.constant dense<0.000000e+00> : vector<4xf32>
    %8 = vector.multi_reduction <add>, %7, %cst_2 [1] : vector<4x512xf32> to vector<4xf32>
    %9 = vector.shape_cast %8 : vector<4xf32> to vector<4x1xf32>
    %cst_3 = arith.constant 0.001953125 : f32
    %10 = vector.broadcast %cst_3 : f32 to vector<4x1xf32>
    %11 = arith.mulf %9, %10 : vector<4x1xf32>
    %cst_4 = arith.constant 9.99999974E-6 : f32
    %12 = vector.broadcast %cst_4 : f32 to vector<4x1xf32>
    %13 = arith.addf %11, %12 : vector<4x1xf32>
    %14 = math.rsqrt %13 : vector<4x1xf32>
    %15 = vector.broadcast %14 : vector<4x1xf32> to vector<4x512xf32>
    %16 = arith.mulf %6, %15 : vector<4x512xf32>
    %c0_5 = arith.constant 0 : index
    %c0_6 = arith.constant 0 : index
    %17 = vector.load %arg2[%c0_5, %c0_6] : memref<4x512xf32, #tpu.memory_space<vmem>>, vector<4x512xf32>
    %c0_7 = arith.constant 0 : index
    %c0_8 = arith.constant 0 : index
    %18 = vector.load %arg3[%c0_7, %c0_8] : memref<4x512xf32, #tpu.memory_space<vmem>>, vector<4x512xf32>
    %19 = arith.mulf %16, %17 : vector<4x512xf32>
    %20 = arith.addf %19, %18 : vector<4x512xf32>
    %c0_9 = arith.constant 0 : index
    %c0_10 = arith.constant 0 : index
    %21 = vector.load %arg4[%c0_9, %c0_10] : memref<4x512xf32, #tpu.memory_space<vmem>>, vector<4x512xf32>
    tpu.vector_store %arg4[%c0_9, %c0_10], %20 {strides = array<i32>} : memref<4x512xf32, #tpu.memory_space<vmem>>, vector<4x512xf32>,
    return
  }
  func.func @transform_0(%arg0: i32) -> (i32, i32) {
    %c0_i32 = arith.constant 0 : i32
    %c0_i32_0 = arith.constant 0 : i32
    return %arg0, %c0_i32 : i32, i32
  }
  func.func @transform_1(%arg0: i32) -> (i32, i32) {
    %c0_i32 = arith.constant 0 : i32
    %c0_i32_0 = arith.constant 0 : i32
    %c0_i32_1 = arith.constant 0 : i32
    return %c0_i32, %c0_i32_0 : i32, i32
  }
  func.func @transform_2(%arg0: i32) -> (i32, i32) {
    %c0_i32 = arith.constant 0 : i32
    %c0_i32_0 = arith.constant 0 : i32
    %c0_i32_1 = arith.constant 0 : i32
    return %c0_i32, %c0_i32_0 : i32, i32
  }
  func.func @transform_3(%arg0: i32) -> (i32, i32) {
    %c0_i32 = arith.constant 0 : i32
    %c0_i32_0 = arith.constant 0 : i32
    return %arg0, %c0_i32 : i32, i32
  }
}

</mosaic_0001>

<bundles_post_ra>
// kernel: tpu_custom_call.1
= control target key start
LH: loop header
LB: loop body
LE: loop exit
PB: predicated region body
PF: predicated region fallthrough
CT: control target
= control target key end

     0   :  { %8 = vsyncpa [#allocation3], 0  ;;  %s321_s0 = inlined_call_operand.hbm [shape: f32[4,512], index: 0, kind: input, shape index: {}]   ;;  %s322_s1 = inlined_call_operand.hbm [shape: f32[4,512], index: 1, kind: input, shape index: {}]   ;;  %s323_s2 = inlined_call_operand.hbm [shape: f32[4,512], index: 2, kind: input, shape index: {}]   ;;  %s324_s3 = inlined_call_operand.hbm [shape: f32[4,512], index: 3, kind: output, shape index: {}]  }
   0x1   :  { %9 = vsyncpa [#allocation6], 0 }
   0x2   :  { %10 = vsyncpa [#allocation4], 0  ;;  %s240_s12 = smov [#allocation5]   ;;  %s241_s14 = smov [#allocation2]  }
   0x3   :  { %s27_s13 = sshll.u32 %s240_s12, 4  ;;  %s17_s15 = sshll.u32 %s241_s14, 4  ;;  %s28_s13 = int_to_ptr.vmem [resolvable:$true] %s27_s13  ;;  %s18_s15 = int_to_ptr.vmem [resolvable:$true] %s17_s15 }
   0x4   :  { %s146_s18 = scalar_lea.hbm %s322_s1, 256 }
   0x5   :  { %p147_p0 = scmp.ne.s32.totalorder %s322_s1, %s146_s18  ;;  %p150_p1 = scmp.lt.u32.totalorder %s146_s18, %s322_s1 }
   0x7   :  { %p152_p2 = pnand %p150_p1, %p147_p0 }
   0x9   :  { %155 = shalt.err (!%p152_p2)
}
   0xa   :  { %s156_s23 = scalar_lea.vmem %s28_s13, 256  ;;  %p161_p4 = scmp.lt.s32.totalorder %s28_s13, %s28_s13 }
   0xb   :  { %p157_p3 = scmp.ne.s32.totalorder %s28_s13, %s156_s23  ;;  %p162_p5 = scmp.lt.s32.totalorder %s156_s23, %s156_s23 }
   0xd   :  { %p163_p6 = por %p162_p5, %p161_p4 }
   0xf   :  { %p164_p7 = pnand %p163_p6, %p157_p3 }
  0x11   :  { %167 = shalt.err (!%p164_p7)
}
  0x12   :  { %30 = dma.hbm_to_vmem [thread:$0]  %s322_s1, 256, %s28_s13, [#allocation6]  }
  0x13   :  { %s168_s28 = scalar_lea.hbm %s321_s0, 256 }
  0x14   :  { %p169_p8 = scmp.ne.s32.totalorder %s321_s0, %s168_s28  ;;  %p172_p9 = scmp.lt.u32.totalorder %s168_s28, %s321_s0 }
  0x16   :  { %p174_p10 = pnand %p172_p9, %p169_p8 }
  0x18   :  { %177 = shalt.err (!%p174_p10)
}
  0x19   :  { %s178_s6 = scalar_lea.vmem %s18_s15, 256  ;;  %p183_p12 = scmp.lt.s32.totalorder %s18_s15, %s18_s15 }
  0x1a   :  { %p179_p11 = scmp.ne.s32.totalorder %s18_s15, %s178_s6  ;;  %p184_p13 = scmp.lt.s32.totalorder %s178_s6, %s178_s6 }
  0x1c   :  { %p185_p0 = por %p184_p13, %p183_p12 }
  0x1e   :  { %p186_p1 = pnand %p185_p0, %p179_p11 }
  0x20   :  { %189 = shalt.err (!%p186_p1)
}
  0x21   :  { %20 = dma.hbm_to_vmem [thread:$0]  %s321_s0, 256, %s18_s15, [#allocation3]  }
  0x22   :  { %s242_s8 = smov [#allocation7]   ;;  %s190_s12 = scalar_lea.hbm %s323_s2, 256 }
  0x23   :  { %s37_s9 = sshll.u32 %s242_s8, 4  ;;  %p191_p2 = scmp.ne.s32.totalorder %s323_s2, %s190_s12  ;;  %s38_s9 = int_to_ptr.vmem [resolvable:$true] %s37_s9 }
  0x24   :  { %p194_p3 = scmp.lt.u32.totalorder %s190_s12, %s323_s2 }
  0x26   :  { %p196_p4 = pnand %p194_p3, %p191_p2 }
  0x28   :  { %199 = shalt.err (!%p196_p4)
}
  0x29   :  { %s200_s18 = scalar_lea.vmem %s38_s9, 256  ;;  %p205_p6 = scmp.lt.s32.totalorder %s38_s9, %s38_s9 }
  0x2a   :  { %p201_p5 = scmp.ne.s32.totalorder %s38_s9, %s200_s18  ;;  %p206_p7 = scmp.lt.s32.totalorder %s200_s18, %s200_s18 }
  0x2c   :  { %p207_p8 = por %p206_p7, %p205_p6 }
  0x2e   :  { %p208_p9 = pnand %p207_p8, %p201_p5 }
  0x30   :  { %211 = shalt.err (!%p208_p9)
}
  0x31   :  { %40 = dma.hbm_to_vmem [thread:$0]  %s323_s2, 256, %s38_s9, [#allocation6]  }
  0x32   :  { %234 = dma.done.wait [#allocation3], 256  }
  0x33   :  { %235 = vsyncadd [#allocation3], 4294967040 }
  0x34   :  { %236 = dma.done.wait [#allocation6], 512  }
  0x35   :  { %237 = vsyncadd [#allocation6], 4294966784  ;;  %vm58_vm0 = vcmask 1043456   ;;  %v50_v0 = vld [vmem:[#allocation2] sm:$0xff]  ;;  %v51_v1 = vld [vmem:[#allocation2 + $0x8] sm:$0xff]  ;;  %v73_v13 = vlaneseq  ;;  %s244_s2 = smov [#allocation8]  }
  0x36   :  { %v54_v2 = vcombine.high %v50_v0, %v50_v0  ;;  %v55_v3 = vcombine.high %v51_v1, %v51_v1  ;;  %v59_v4 = vsel %vm58_vm0, %v50_v0, 0.0  ;;  %v62_v6 = vsel %vm58_vm0, %v51_v1, 0.0  ;;  %v111_v38 = vld [vmem:[#allocation5] sm:$0xff]  ;;  %v112_v39 = vld [vmem:[#allocation5 + $0x8] sm:$0xff]  ;;  %v113_v42 = vld [vmem:[#allocation7] sm:$0xff]  ;;  %s127_s19 = sshll.u32 %s244_s2, 4  ;;  %s128_s19 = int_to_ptr.vmem [resolvable:$true] %s127_s19 }
  0x37   :  { %v243_v11 = vmov 839922192   ;;  %v74_v15 = vshrl.u32 %v73_v13, 7  ;;  %v114_v43 = vld [vmem:[#allocation7 + $0x8] sm:$0xff]  ;;  %s212_s20 = scalar_lea.vmem %s128_s19, 256  ;;  %p217_p11 = scmp.lt.s32.totalorder %s128_s19, %s128_s19 }
  0x38   :  { %v60_v5 = vsel %vm58_vm0, %v54_v2, 0.0  ;;  %v64_v8 = vsel %vm58_vm0, %v55_v3, 0.0  ;;  %v71_v12 = vunpack.c.l.s4 %v243_v11  ;;  %p213_p10 = scmp.ne.s32.totalorder %s128_s19, %s212_s20  ;;  %p218_p12 = scmp.lt.s32.totalorder %s212_s20, %s212_s20 }
  0x39   :  { %v61_v7 = vadd.f32 %v60_v5, %v59_v4 }
  0x3a   :  { %v72_v14 = vunpack.c.0.s8 %v71_v12  ;;  %p219_p13 = por %p218_p12, %p217_p11 }
  0x3b   :  { %v63_v9 = vadd.f32 %v62_v6, %v61_v7 }
  0x3c   :  { %v75_v16 = vsub.s32 %v72_v14, %v74_v15  ;;  %p220_p0 = pnand %p219_p13, %p213_p10 }
  0x3d   :  { %v65_v10 = vadd.f32 %v64_v8, %v63_v9 }
  0x3f   :  { %66 = vadd.xlane.f32.xlu0 %v65_v10 }
  0xcc   :  { %v67_v17 = vpop.xlane.xlu0 %66 }
  0xcd   :  { %v68_v18 = vmul.f32 0.001953125, %v67_v17 }
  0xcf   :  { %v76_v19 = vrot.slane %v68_v18, %v75_v16 }
  0xd1   :  { %v78_v20 = vsub.f32 %v50_v0, %v76_v19  ;;  %v79_v21 = vsub.f32 %v51_v1, %v76_v19 }
  0xd3   :  { %v80_v22 = vmul.f32 %v78_v20, %v78_v20  ;;  %v81_v23 = vmul.f32 %v79_v21, %v79_v21 }
  0xd5   :  { %v84_v24 = vcombine.high %v80_v22, %v80_v22  ;;  %v85_v25 = vcombine.high %v81_v23, %v81_v23  ;;  %v88_v26 = vsel %vm58_vm0, %v80_v22, 0.0  ;;  %v91_v29 = vsel %vm58_vm0, %v81_v23, 0.0 }
  0xd7   :  { %v89_v27 = vsel %vm58_vm0, %v84_v24, 0.0  ;;  %v93_v31 = vsel %vm58_vm0, %v85_v25, 0.0 }
  0xd8   :  { %v90_v28 = vadd.f32 %v89_v27, %v88_v26 }
  0xda   :  { %v92_v30 = vadd.f32 %v91_v29, %v90_v28 }
  0xdc   :  { %v94_v32 = vadd.f32 %v93_v31, %v92_v30 }
  0xde   :  { %95 = vadd.xlane.f32.xlu0 %v94_v32 }
 0x16b   :  { %v96_v33 = vpop.xlane.xlu0 %95 }
 0x16c   :  { %v97_v34 = vmul.f32 0.001953125, %v96_v33 }
 0x16e   :  { %v98_v35 = vadd.f32 1e-05, %v97_v34 }
 0x170   :  { %144 = vrsqrt.f32 %v98_v35 }
 0x17a   :  { %v145_v36 = vpop.eup %144 }
 0x17b   :  { %v107_v37 = vrot.slane %v145_v36, %v75_v16 }
 0x17d   :  { %v109_v40 = vmul.f32 %v107_v37, %v78_v20  ;;  %v110_v41 = vmul.f32 %v107_v37, %v79_v21 }
 0x17f   :  { %v115_v44 = vmul.f32 %v111_v38, %v109_v40  ;;  %v116_v45 = vmul.f32 %v112_v39, %v110_v41 }
 0x181   :  { %v117_v46 = vadd.f32 %v115_v44, %v113_v42  ;;  %v118_v47 = vadd.f32 %v116_v45, %v114_v43 }
 0x183   :  { %119 = vst [vmem:[#allocation8] sm:$0xff] %v117_v46  ;;  %120 = vst [vmem:[#allocation8 + $0x8] sm:$0xff] %v118_v47 }
 0x184   :  { %223 = shalt.err (!%p220_p0)
}
 0x185   :  { %s224_s23 = scalar_lea.hbm %s324_s3, 256 }
 0x186   :  { %p225_p1 = scmp.ne.s32.totalorder %s324_s3, %s224_s23  ;;  %p228_p2 = scmp.lt.u32.totalorder %s224_s23, %s324_s3 }
 0x188   :  { %p230_p3 = pnand %p228_p2, %p225_p1 }
 0x18a   :  { %233 = shalt.err (!%p230_p3)
}
 0x18b   :  { %130 = dma.vmem_to_hbm [thread:$0]  %s128_s19, 256, %s324_s3, [#allocation4]  }
 0x18c   :  { %238 = dma.done.wait [#allocation4], 256  }
 0x18d   :  { %239 = vsyncadd [#allocation4], 4294967040 }
 0x18e   :  { %134 = vsyncpa [#allocation3], 1 }
 0x18f   :  { %135 = vsyncpa [#allocation6], 1 }
 0x190   :  { %136 = vsyncpa [#allocation4], 1 }

// kernel: tpu_custom_call.1
= control target key start
LH: loop header
LB: loop body
LE: loop exit
PB: predicated region body
PF: predicated region fallthrough
CT: control target
= control target key end

     0   :  { %8 = vsyncpa [#allocation3], 0  ;;  %s321_s0 = inlined_call_operand.hbm [shape: f32[4,512], index: 0, kind: input, shape index: {}]   ;;  %s322_s1 = inlined_call_operand.hbm [shape: f32[4,512], index: 1, kind: input, shape index: {}]   ;;  %s323_s2 = inlined_call_operand.hbm [shape: f32[4,512], index: 2, kind: input, shape index: {}]   ;;  %s324_s3 = inlined_call_operand.hbm [shape: f32[4,512], index: 3, kind: output, shape index: {}]  }
   0x1   :  { %9 = vsyncpa [#allocation6], 0 }
   0x2   :  { %10 = vsyncpa [#allocation4], 0  ;;  %s240_s12 = smov [#allocation5]   ;;  %s241_s14 = smov [#allocation2]  }
   0x3   :  { %s27_s13 = sshll.u32 %s240_s12, 4  ;;  %s17_s15 = sshll.u32 %s241_s14, 4  ;;  %s28_s13 = int_to_ptr.vmem [resolvable:$true] %s27_s13  ;;  %s18_s15 = int_to_ptr.vmem [resolvable:$true] %s17_s15 }
   0x4   :  { %s146_s18 = scalar_lea.hbm %s322_s1, 256 }
   0x5   :  { %p147_p0 = scmp.ne.s32.totalorder %s322_s1, %s146_s18  ;;  %p150_p1 = scmp.lt.u32.totalorder %s146_s18, %s322_s1 }
   0x7   :  { %p152_p2 = pnand %p150_p1, %p147_p0 }
   0x9   :  { %155 = shalt.err (!%p152_p2)
}
   0xa   :  { %s156_s23 = scalar_lea.vmem %s28_s13, 256  ;;  %p161_p4 = scmp.lt.s32.totalorder %s28_s13, %s28_s13 }
   0xb   :  { %p157_p3 = scmp.ne.s32.totalorder %s28_s13, %s156_s23  ;;  %p162_p5 = scmp.lt.s32.totalorder %s156_s23, %s156_s23 }
   0xd   :  { %p163_p6 = por %p162_p5, %p161_p4 }
   0xf   :  { %p164_p7 = pnand %p163_p6, %p157_p3 }
  0x11   :  { %167 = shalt.err (!%p164_p7)
}
  0x12   :  { %30 = dma.hbm_to_vmem [thread:$0]  %s322_s1, 256, %s28_s13, [#allocation6]  }
  0x13   :  { %s168_s28 = scalar_lea.hbm %s321_s0, 256 }
  0x14   :  { %p169_p8 = scmp.ne.s32.totalorder %s321_s0, %s168_s28  ;;  %p172_p9 = scmp.lt.u32.totalorder %s168_s28, %s321_s0 }
  0x16   :  { %p174_p10 = pnand %p172_p9, %p169_p8 }
  0x18   :  { %177 = shalt.err (!%p174_p10)
}
  0x19   :  { %s178_s6 = scalar_lea.vmem %s18_s15, 256  ;;  %p183_p12 = scmp.lt.s32.totalorder %s18_s15, %s18_s15 }
  0x1a   :  { %p179_p11 = scmp.ne.s32.totalorder %s18_s15, %s178_s6  ;;  %p184_p13 = scmp.lt.s32.totalorder %s178_s6, %s178_s6 }
  0x1c   :  { %p185_p0 = por %p184_p13, %p183_p12 }
  0x1e   :  { %p186_p1 = pnand %p185_p0, %p179_p11 }
  0x20   :  { %189 = shalt.err (!%p186_p1)
}
  0x21   :  { %20 = dma.hbm_to_vmem [thread:$0]  %s321_s0, 256, %s18_s15, [#allocation3]  }
  0x22   :  { %s242_s8 = smov [#allocation7]   ;;  %s190_s12 = scalar_lea.hbm %s323_s2, 256 }
  0x23   :  { %s37_s9 = sshll.u32 %s242_s8, 4  ;;  %p191_p2 = scmp.ne.s32.totalorder %s323_s2, %s190_s12  ;;  %s38_s9 = int_to_ptr.vmem [resolvable:$true] %s37_s9 }
  0x24   :  { %p194_p3 = scmp.lt.u32.totalorder %s190_s12, %s323_s2 }
  0x26   :  { %p196_p4 = pnand %p194_p3, %p191_p2 }
  0x28   :  { %199 = shalt.err (!%p196_p4)
}
  0x29   :  { %s200_s18 = scalar_lea.vmem %s38_s9, 256  ;;  %p205_p6 = scmp.lt.s32.totalorder %s38_s9, %s38_s9 }
  0x2a   :  { %p201_p5 = scmp.ne.s32.totalorder %s38_s9, %s200_s18  ;;  %p206_p7 = scmp.lt.s32.totalorder %s200_s18, %s200_s18 }
  0x2c   :  { %p207_p8 = por %p206_p7, %p205_p6 }
  0x2e   :  { %p208_p9 = pnand %p207_p8, %p201_p5 }
  0x30   :  { %211 = shalt.err (!%p208_p9)
}
  0x31   :  { %40 = dma.hbm_to_vmem [thread:$0]  %s323_s2, 256, %s38_s9, [#allocation6]  }
  0x32   :  { %234 = dma.done.wait [#allocation3], 256  }
  0x33   :  { %235 = vsyncadd [#allocation3], 4294967040 }
  0x34   :  { %236 = dma.done.wait [#allocation6], 512  }
  0x35   :  { %237 = vsyncadd [#allocation6], 4294966784  ;;  %vm58_vm0 = vcmask 1043456   ;;  %v50_v0 = vld [vmem:[#allocation2] sm:$0xff]  ;;  %v51_v1 = vld [vmem:[#allocation2 + $0x8] sm:$0xff]  ;;  %v73_v13 = vlaneseq  ;;  %s244_s2 = smov [#allocation8]  }
  0x36   :  { %v54_v2 = vcombine.high %v50_v0, %v50_v0  ;;  %v55_v3 = vcombine.high %v51_v1, %v51_v1  ;;  %v59_v4 = vsel %vm58_vm0, %v50_v0, 0.0  ;;  %v62_v6 = vsel %vm58_vm0, %v51_v1, 0.0  ;;  %v111_v38 = vld [vmem:[#allocation5] sm:$0xff]  ;;  %v112_v39 = vld [vmem:[#allocation5 + $0x8] sm:$0xff]  ;;  %v113_v42 = vld [vmem:[#allocation7] sm:$0xff]  ;;  %s127_s19 = sshll.u32 %s244_s2, 4  ;;  %s128_s19 = int_to_ptr.vmem [resolvable:$true] %s127_s19 }
  0x37   :  { %v243_v11 = vmov 839922192   ;;  %v74_v15 = vshrl.u32 %v73_v13, 7  ;;  %v114_v43 = vld [vmem:[#allocation7 + $0x8] sm:$0xff]  ;;  %s212_s20 = scalar_lea.vmem %s128_s19, 256  ;;  %p217_p11 = scmp.lt.s32.totalorder %s128_s19, %s128_s19 }
  0x38   :  { %v60_v5 = vsel %vm58_vm0, %v54_v2, 0.0  ;;  %v64_v8 = vsel %vm58_vm0, %v55_v3, 0.0  ;;  %v71_v12 = vunpack.c.l.s4 %v243_v11  ;;  %p213_p10 = scmp.ne.s32.totalorder %s128_s19, %s212_s20  ;;  %p218_p12 = scmp.lt.s32.totalorder %s212_s20, %s212_s20 }
  0x39   :  { %v61_v7 = vadd.f32 %v60_v5, %v59_v4 }
  0x3a   :  { %v72_v14 = vunpack.c.0.s8 %v71_v12  ;;  %p219_p13 = por %p218_p12, %p217_p11 }
  0x3b   :  { %v63_v9 = vadd.f32 %v62_v6, %v61_v7 }
  0x3c   :  { %v75_v16 = vsub.s32 %v72_v14, %v74_v15  ;;  %p220_p0 = pnand %p219_p13, %p213_p10 }
  0x3d   :  { %v65_v10 = vadd.f32 %v64_v8, %v63_v9 }
  0x3f   :  { %66 = vadd.xlane.f32.xlu0 %v65_v10 }
  0xcc   :  { %v67_v17 = vpop.xlane.xlu0 %66 }
  0xcd   :  { %v68_v18 = vmul.f32 0.001953125, %v67_v17 }
  0xcf   :  { %v76_v19 = vrot.slane %v68_v18, %v75_v16 }
  0xd1   :  { %v78_v20 = vsub.f32 %v50_v0, %v76_v19  ;;  %v79_v21 = vsub.f32 %v51_v1, %v76_v19 }
  0xd3   :  { %v80_v22 = vmul.f32 %v78_v20, %v78_v20  ;;  %v81_v23 = vmul.f32 %v79_v21, %v79_v21 }
  0xd5   :  { %v84_v24 = vcombine.high %v80_v22, %v80_v22  ;;  %v85_v25 = vcombine.high %v81_v23, %v81_v23  ;;  %v88_v26 = vsel %vm58_vm0, %v80_v22, 0.0  ;;  %v91_v29 = vsel %vm58_vm0, %v81_v23, 0.0 }
  0xd7   :  { %v89_v27 = vsel %vm58_vm0, %v84_v24, 0.0  ;;  %v93_v31 = vsel %vm58_vm0, %v85_v25, 0.0 }
  0xd8   :  { %v90_v28 = vadd.f32 %v89_v27, %v88_v26 }
  0xda   :  { %v92_v30 = vadd.f32 %v91_v29, %v90_v28 }
  0xdc   :  { %v94_v32 = vadd.f32 %v93_v31, %v92_v30 }
  0xde   :  { %95 = vadd.xlane.f32.xlu0 %v94_v32 }
 0x16b   :  { %v96_v33 = vpop.xlane.xlu0 %95 }
 0x16c   :  { %v97_v34 = vmul.f32 0.001953125, %v96_v33 }
 0x16e   :  { %v98_v35 = vadd.f32 1e-05, %v97_v34 }
 0x170   :  { %144 = vrsqrt.f32 %v98_v35 }
 0x17a   :  { %v145_v36 = vpop.eup %144 }
 0x17b   :  { %v107_v37 = vrot.slane %v145_v36, %v75_v16 }
 0x17d   :  { %v109_v40 = vmul.f32 %v107_v37, %v78_v20  ;;  %v110_v41 = vmul.f32 %v107_v37, %v79_v21 }
 0x17f   :  { %v115_v44 = vmul.f32 %v111_v38, %v109_v40  ;;  %v116_v45 = vmul.f32 %v112_v39, %v110_v41 }
 0x181   :  { %v117_v46 = vadd.f32 %v115_v44, %v113_v42  ;;  %v118_v47 = vadd.f32 %v116_v45, %v114_v43 }
 0x183   :  { %119 = vst [vmem:[#allocation8] sm:$0xff] %v117_v46  ;;  %120 = vst [vmem:[#allocation8 + $0x8] sm:$0xff] %v118_v47 }
 0x184   :  { %223 = shalt.err (!%p220_p0)
}
 0x185   :  { %s224_s23 = scalar_lea.hbm %s324_s3, 256 }
 0x186   :  { %p225_p1 = scmp.ne.s32.totalorder %s324_s3, %s224_s23  ;;  %p228_p2 = scmp.lt.u32.totalorder %s224_s23, %s324_s3 }
 0x188   :  { %p230_p3 = pnand %p228_p2, %p225_p1 }
 0x18a   :  { %233 = shalt.err (!%p230_p3)
}
 0x18b   :  { %130 = dma.vmem_to_hbm [thread:$0]  %s128_s19, 256, %s324_s3, [#allocation4]  }
 0x18c   :  { %238 = dma.done.wait [#allocation4], 256  }
 0x18d   :  { %239 = vsyncadd [#allocation4], 4294967040 }
 0x18e   :  { %134 = vsyncpa [#allocation3], 1 }
 0x18f   :  { %135 = vsyncpa [#allocation6], 1 }
 0x190   :  { %136 = vsyncpa [#allocation4], 1 }

</bundles_post_ra>
